<compile_context>
chip_gen: v7x
topology: tpu7x:2x2x1
jax: 0.10.0
libtpu: 0.0.40
codegen_flags: <defaults>
</compile_context>

<pallas_src>
import numpy as np
import jax
import jax.numpy as jnp
from jax import lax
from jax.experimental import pallas as pl
from jax.experimental.pallas import tpu as pltpu


def _make_grad3d_kernel(D, H, W, TD, out_dtype):
    HW = H * W

    def kernel(x_ref, prev_ref, next_ref, o_ref):
        # x_ref: (tb, TD, HW)   prev/next_ref: (tb, 1, 1, HW)   o_ref: (tb, 3, TD, HW)
        x = x_ref[...]                               # native dtype, no fp32 copy

        # Tiny lane-position iota (a couple of vregs), broadcast in the selects.
        col = lax.broadcasted_iota(jnp.int32, (1, 1, HW), 2)

        # ---- d/dx : +-1 lane rotation inside each W row, replicate at edges.
        if W > 1:
            w_pos = col % W
            xp1 = jnp.where(w_pos == W - 1, x, pltpu.roll(x, HW - 1, axis=2))
            xm1 = jnp.where(w_pos == 0, x, pltpu.roll(x, 1, axis=2))
            dx = 0.5 * (xp1 - xm1)
        else:
            dx = jnp.zeros_like(x)
        o_ref[:, 0] = dx.astype(out_dtype)

        # ---- d/dy : +-W lane rotation (one H row), replicate rows at edges.
        if H > 1:
            yp1 = jnp.where(col >= HW - W, x, pltpu.roll(x, HW - W, axis=2))
            ym1 = jnp.where(col < W, x, pltpu.roll(x, W, axis=2))
            dy = 0.5 * (yp1 - ym1)
        else:
            dy = jnp.zeros_like(x)
        o_ref[:, 1] = dy.astype(out_dtype)

        # ---- d/dz : +-1 plane shift along D.  Halo inputs hold the globally
        # edge-clamped neighbour planes of this D tile, so the concatenates
        # below are exactly the halo stitch.  torch's kernel.flip(-3) makes
        # this dz = 0.5 * (x[d-1] - x[d+1]).
        if D > 1:
            prev = prev_ref[:, 0]                    # (tb, 1, HW) = clamped x[d0-1]
            nxt = next_ref[:, 0]                     # (tb, 1, HW) = clamped x[d0+TD]
            zm1 = jnp.concatenate([prev, x[:, :TD - 1, :]], axis=1)
            zp1 = jnp.concatenate([x[:, 1:, :], nxt], axis=1)
            dz = 0.5 * (zm1 - zp1)
        else:
            dz = jnp.zeros_like(x)
        o_ref[:, 2] = dz.astype(out_dtype)

    return kernel


def spatial_gradient3d(x, mode='diff', order=1):
    if mode != 'diff' or order != 1:
        # TODO(synk): 'sobel' mode and order=2 (6-channel) weights not wired up.
        raise NotImplementedError("only mode='diff', order=1 is implemented")
    B, C, D, H, W = x.shape
    N, HW = B * C, H * W
    itemsize = jnp.dtype(x.dtype).itemsize

    # ---- chip-aware VMEM budget (v5e/v6e: 128 MiB, v7x: 64 MiB per TC). ----
    try:
        vmem_cap = int(pltpu.get_tpu_info().vmem_capacity_bytes)
    except Exception:
        vmem_cap = 64 * 1024 * 1024                  # conservative fallback
    vmem_limit = min(vmem_cap, max(32 * 1024 * 1024, int(0.6 * vmem_cap)))
    # Per step: double-buffered (in + 3x out) blocks plus a few block-sized
    # temporaries stay live -> budget the *input* block at ~1/16 of the limit.
    in_budget = max(512 * 1024, vmem_limit // 16)

    # ---- D tiling: TD divides D and is a multiple of the sublane pack (or is
    # all of D), so blocks stay (8,128)-aligned and the dz halo is one plane.
    sub = {4: 8, 2: 16, 1: 32}.get(itemsize, 8)
    plane_bytes = HW * itemsize
    cands = [D] + [t for t in range(sub, D, sub) if D % t == 0]
    fitting = [t for t in cands if t * plane_bytes <= in_budget]
    TD = max(fitting) if fitting else min(cands)
    nd = D // TD

    # ---- pack tb (b,c) slabs per step to amortize ~0.35us/step overhead; a
    # ragged last block along N is harmless (purely per-slab elementwise work).
    tile_bytes = TD * plane_bytes
    tb = int(max(1, min(N, in_budget // tile_bytes)))
    nb = pl.cdiv(N, tb)
    # Prefer an even total step count so v7x's two TensorCores split evenly.
    if (nb * nd) % 2 == 1 and N > 1:
        tb_alt = pl.cdiv(N, nb + 1)
        nb_alt = pl.cdiv(N, tb_alt)
        if (nb_alt * nd) % 2 == 0:
            tb, nb = tb_alt, nb_alt

    xf = x.reshape(N, D, HW)          # free reshape: lane-dense trailing axis
    x4 = xf.reshape(N, D, 1, HW)      # free reshape: per-plane halo view

    out = pl.pallas_call(
        _make_grad3d_kernel(D, H, W, TD, x.dtype),
        out_shape=jax.ShapeDtypeStruct((N, 3, D, HW), x.dtype),
        grid=(nb, nd),
        in_specs=[
            pl.BlockSpec((tb, TD, HW), lambda i, j: (i, j, 0)),
            # one-plane halos, globally clamped (replicate padding along D)
            pl.BlockSpec((tb, 1, 1, HW),
                         lambda i, j: (i, jnp.maximum(j * TD - 1, 0), 0, 0)),
            pl.BlockSpec((tb, 1, 1, HW),
                         lambda i, j: (i, jnp.minimum(j * TD + TD, D - 1), 0, 0)),
        ],
        out_specs=pl.BlockSpec((tb, 3, TD, HW), lambda i, j: (i, 0, j, 0)),
        compiler_params=pltpu.CompilerParams(
            dimension_semantics=("parallel", "parallel"),
            vmem_limit_bytes=vmem_limit),
        cost_estimate=pl.CostEstimate(
            flops=6 * N * D * HW,
            transcendentals=0,
            bytes_accessed=4 * N * D * HW * itemsize),
    )(xf, x4, x4)
    return out.reshape(B, C, 3, D, H, W)


def _reference(x):
    """Pure-JAX reference replicating the exact PyTorch semantics."""
    xp = jnp.pad(x, ((0, 0), (0, 0), (1, 1), (1, 1), (1, 1)), mode='edge')
    dx = 0.5 * (xp[:, :, 1:-1, 1:-1, 2:] - xp[:, :, 1:-1, 1:-1, :-2])
    dy = 0.5 * (xp[:, :, 1:-1, 2:, 1:-1] - xp[:, :, 1:-1, :-2, 1:-1])
    # the flip(-3) in the torch code makes dz = 0.5*(x[d-1] - x[d+1])
    dz = 0.5 * (xp[:, :, :-2, 1:-1, 1:-1] - xp[:, :, 2:, 1:-1, 1:-1])
    return jnp.stack([dx, dy, dz], axis=2)


if __name__ == "__main__":
    key = jax.random.PRNGKey(0)
    B, C, D, H, W = 2, 4, 8, 16, 16
    x = jax.random.normal(key, (B, C, D, H, W), dtype=jnp.float32)

    out = jax.block_until_ready(spatial_gradient3d(x, mode='diff', order=1))
    ref = jax.block_until_ready(_reference(x))

    assert out.shape == (B, C, 3, D, H, W), out.shape
    np.testing.assert_allclose(np.asarray(out), np.asarray(ref),
                               rtol=1e-5, atol=1e-5)
    print("KERNEL_OK")
</pallas_src>

<mosaic_0001>
module attributes {stable_mosaic.version = 11 : i64} {
  func.func @kernel(%arg0: i32, %arg1: i32, %arg2: memref<4x8x256xf32, #tpu.memory_space<vmem>>, %arg3: memref<4x1x1x256xf32, #tpu.memory_space<vmem>>, %arg4: memref<4x1x1x256xf32, #tpu.memory_space<vmem>>, %arg5: memref<4x3x8x256xf32, #tpu.memory_space<vmem>>) attributes {dimension_semantics = [#tpu.dimension_semantics<parallel>, #tpu.dimension_semantics<parallel>], iteration_bounds = array<i64: 2, 1>, scalar_prefetch = 0 : i64, scratch_operands = 0 : i64, tpu.core_type = #tpu.core_type<tc>, window_params = [{transform_indices = @transform_0, window_bounds = array<i64: 4, 8, 256>}, {transform_indices = @transform_1, window_bounds = array<i64: 4, 1, 1, 256>}, {transform_indices = @transform_2, window_bounds = array<i64: 4, 1, 1, 256>}, {transform_indices = @transform_3, window_bounds = array<i64: 4, 3, 8, 256>}]} {
    %c0 = arith.constant 0 : index
    %c0_0 = arith.constant 0 : index
    %c0_1 = arith.constant 0 : index
    %0 = vector.load %arg2[%c0, %c0_0, %c0_1] : memref<4x8x256xf32, #tpu.memory_space<vmem>>, vector<4x8x256xf32>
    %1 = tpu.iota {dimensions = array<i32: 2>} : vector<1x1x256xi32>
    %c16_i32 = arith.constant 16 : i32
    %c0_i32 = arith.constant 0 : i32
    %2 = arith.cmpi eq, %c16_i32, %c0_i32 : i32
    %c1_i32 = arith.constant 1 : i32
    %3 = arith.select %2, %c1_i32, %c16_i32 : i32
    %4 = vector.broadcast %3 : i32 to vector<1x1x256xi32>
    %5 = arith.remsi %1, %4 : vector<1x1x256xi32>
    %c0_i32_2 = arith.constant 0 : i32
    %6 = vector.broadcast %c0_i32_2 : i32 to vector<1x1x256xi32>
    %7 = arith.cmpi ne, %5, %6 : vector<1x1x256xi32>
    %c0_i32_3 = arith.constant 0 : i32
    %8 = vector.broadcast %c0_i32_3 : i32 to vector<1x1x256xi32>
    %9 = arith.cmpi slt, %5, %8 : vector<1x1x256xi32>
    %c0_i32_4 = arith.constant 0 : i32
    %10 = arith.cmpi slt, %3, %c0_i32_4 : i32
    %11 = vector.broadcast %10 : i1 to vector<1x1x256xi1>
    %12 = vector.broadcast %11 : vector<1x1x256xi1> to vector<1x1x256xi1>
    %13 = arith.xori %9, %12 : vector<1x1x256xi1>
    %14 = arith.andi %13, %7 : vector<1x1x256xi1>
    %15 = vector.broadcast %3 : i32 to vector<1x1x256xi32>
    %16 = arith.addi %5, %15 : vector<1x1x256xi32>
    %17 = arith.select %14, %16, %5 : vector<1x1x256xi1>, vector<1x1x256xi32>
    %c15_i32 = arith.constant 15 : i32
    %18 = vector.broadcast %c15_i32 : i32 to vector<1x1x256xi32>
    %19 = arith.cmpi eq, %17, %18 : vector<1x1x256xi32>
    %c255_i32 = arith.constant 255 : i32
    %20 = tpu.dynamic_rotate %0 by %c255_i32 dim 2 : vector<4x8x256xf32>, i32 -> vector<4x8x256xf32>
    %21 = vector.shape_cast %19 : vector<1x1x256xi1> to vector<1x1x256xi1>
    %22 = vector.broadcast %21 : vector<1x1x256xi1> to vector<4x8x256xi1>
    %23 = arith.select %22, %0, %20 : vector<4x8x256xi1>, vector<4x8x256xf32>
    %c0_i32_5 = arith.constant 0 : i32
    %24 = vector.broadcast %c0_i32_5 : i32 to vector<1x1x256xi32>
    %25 = arith.cmpi eq, %17, %24 : vector<1x1x256xi32>
    %c1_i32_6 = arith.constant 1 : i32
    %26 = tpu.dynamic_rotate %0 by %c1_i32_6 dim 2 : vector<4x8x256xf32>, i32 -> vector<4x8x256xf32>
    %27 = vector.shape_cast %25 : vector<1x1x256xi1> to vector<1x1x256xi1>
    %28 = vector.broadcast %27 : vector<1x1x256xi1> to vector<4x8x256xi1>
    %29 = arith.select %28, %0, %26 : vector<4x8x256xi1>, vector<4x8x256xf32>
    %30 = arith.subf %23, %29 : vector<4x8x256xf32>
    %cst = arith.constant 5.000000e-01 : f32
    %31 = vector.broadcast %cst : f32 to vector<4x8x256xf32>
    %32 = arith.mulf %31, %30 : vector<4x8x256xf32>
    %c0_7 = arith.constant 0 : index
    %c0_8 = arith.constant 0 : index
    %c0_9 = arith.constant 0 : index
    %c0_10 = arith.constant 0 : index
    %33 = vector.load %arg5[%c0_7, %c0_8, %c0_9, %c0_10] : memref<4x3x8x256xf32, #tpu.memory_space<vmem>>, vector<4x1x8x256xf32>
    %34 = vector.shape_cast %33 : vector<4x1x8x256xf32> to vector<4x8x256xf32>
    %35 = vector.shape_cast %32 : vector<4x8x256xf32> to vector<4x1x8x256xf32>
    tpu.vector_store %arg5[%c0_7, %c0_8, %c0_9, %c0_10], %35 {strides = array<i32>} : memref<4x3x8x256xf32, #tpu.memory_space<vmem>>, vector<4x1x8x256xf32>,
    %c240_i32 = arith.constant 240 : i32
    %36 = vector.broadcast %c240_i32 : i32 to vector<1x1x256xi32>
    %37 = arith.cmpi sge, %1, %36 : vector<1x1x256xi32>
    %c240_i32_11 = arith.constant 240 : i32
    %38 = tpu.dynamic_rotate %0 by %c240_i32_11 dim 2 : vector<4x8x256xf32>, i32 -> vector<4x8x256xf32>
    %39 = vector.shape_cast %37 : vector<1x1x256xi1> to vector<1x1x256xi1>
    %40 = vector.broadcast %39 : vector<1x1x256xi1> to vector<4x8x256xi1>
    %41 = arith.select %40, %0, %38 : vector<4x8x256xi1>, vector<4x8x256xf32>
    %c16_i32_12 = arith.constant 16 : i32
    %42 = vector.broadcast %c16_i32_12 : i32 to vector<1x1x256xi32>
    %43 = arith.cmpi slt, %1, %42 : vector<1x1x256xi32>
    %c16_i32_13 = arith.constant 16 : i32
    %44 = tpu.dynamic_rotate %0 by %c16_i32_13 dim 2 : vector<4x8x256xf32>, i32 -> vector<4x8x256xf32>
    %45 = vector.shape_cast %43 : vector<1x1x256xi1> to vector<1x1x256xi1>
    %46 = vector.broadcast %45 : vector<1x1x256xi1> to vector<4x8x256xi1>
    %47 = arith.select %46, %0, %44 : vector<4x8x256xi1>, vector<4x8x256xf32>
    %48 = arith.subf %41, %47 : vector<4x8x256xf32>
    %cst_14 = arith.constant 5.000000e-01 : f32
    %49 = vector.broadcast %cst_14 : f32 to vector<4x8x256xf32>
    %50 = arith.mulf %49, %48 : vector<4x8x256xf32>
    %c0_15 = arith.constant 0 : index
    %c1 = arith.constant 1 : index
    %c0_16 = arith.constant 0 : index
    %c0_17 = arith.constant 0 : index
    %51 = vector.load %arg5[%c0_15, %c1, %c0_16, %c0_17] : memref<4x3x8x256xf32, #tpu.memory_space<vmem>>, vector<4x1x8x256xf32>
    %52 = vector.shape_cast %51 : vector<4x1x8x256xf32> to vector<4x8x256xf32>
    %53 = vector.shape_cast %50 : vector<4x8x256xf32> to vector<4x1x8x256xf32>
    tpu.vector_store %arg5[%c0_15, %c1, %c0_16, %c0_17], %53 {strides = array<i32>} : memref<4x3x8x256xf32, #tpu.memory_space<vmem>>, vector<4x1x8x256xf32>,
    %c0_18 = arith.constant 0 : index
    %c0_19 = arith.constant 0 : index
    %c0_20 = arith.constant 0 : index
    %c0_21 = arith.constant 0 : index
    %54 = vector.load %arg3[%c0_18, %c0_19, %c0_20, %c0_21] : memref<4x1x1x256xf32, #tpu.memory_space<vmem>>, vector<4x1x1x256xf32>
    %55 = vector.shape_cast %54 : vector<4x1x1x256xf32> to vector<4x1x256xf32>
    %c0_22 = arith.constant 0 : index
    %c0_23 = arith.constant 0 : index
    %c0_24 = arith.constant 0 : index
    %c0_25 = arith.constant 0 : index
    %56 = vector.load %arg4[%c0_22, %c0_23, %c0_24, %c0_25] : memref<4x1x1x256xf32, #tpu.memory_space<vmem>>, vector<4x1x1x256xf32>
    %57 = vector.shape_cast %56 : vector<4x1x1x256xf32> to vector<4x1x256xf32>
    %58 = vector.extract_strided_slice %0 {offsets = [0, 0, 0], sizes = [4, 7, 256], strides = [1, 1, 1]} : vector<4x8x256xf32> to vector<4x7x256xf32>
    %59 = tpu.concatenate %55, %58 in 1 : vector<4x1x256xf32>, vector<4x7x256xf32> -> vector<4x8x256xf32>
    %60 = vector.extract_strided_slice %0 {offsets = [0, 1, 0], sizes = [4, 7, 256], strides = [1, 1, 1]} : vector<4x8x256xf32> to vector<4x7x256xf32>
    %61 = tpu.concatenate %60, %57 in 1 : vector<4x7x256xf32>, vector<4x1x256xf32> -> vector<4x8x256xf32>
    %62 = arith.subf %59, %61 : vector<4x8x256xf32>
    %cst_26 = arith.constant 5.000000e-01 : f32
    %63 = vector.broadcast %cst_26 : f32 to vector<4x8x256xf32>
    %64 = arith.mulf %63, %62 : vector<4x8x256xf32>
    %c0_27 = arith.constant 0 : index
    %c2 = arith.constant 2 : index
    %c0_28 = arith.constant 0 : index
    %c0_29 = arith.constant 0 : index
    %65 = vector.load %arg5[%c0_27, %c2, %c0_28, %c0_29] : memref<4x3x8x256xf32, #tpu.memory_space<vmem>>, vector<4x1x8x256xf32>
    %66 = vector.shape_cast %65 : vector<4x1x8x256xf32> to vector<4x8x256xf32>
    %67 = vector.shape_cast %64 : vector<4x8x256xf32> to vector<4x1x8x256xf32>
    tpu.vector_store %arg5[%c0_27, %c2, %c0_28, %c0_29], %67 {strides = array<i32>} : memref<4x3x8x256xf32, #tpu.memory_space<vmem>>, vector<4x1x8x256xf32>,
    return
  }
  func.func @transform_0(%arg0: i32, %arg1: i32) -> (i32, i32, i32) {
    %c0_i32 = arith.constant 0 : i32
    %c0_i32_0 = arith.constant 0 : i32
    return %arg0, %arg1, %c0_i32 : i32, i32, i32
  }
  func.func @transform_1(%arg0: i32, %arg1: i32) -> (i32, i32, i32, i32) {
    %c8_i32 = arith.constant 8 : i32
    %0 = arith.muli %arg1, %c8_i32 : i32
    %c1_i32 = arith.constant 1 : i32
    %1 = arith.subi %0, %c1_i32 : i32
    %c0_i32 = arith.constant 0 : i32
    %2 = arith.maxsi %1, %c0_i32 : i32
    %c0_i32_0 = arith.constant 0 : i32
    %c0_i32_1 = arith.constant 0 : i32
    %c0_i32_2 = arith.constant 0 : i32
    return %arg0, %2, %c0_i32_0, %c0_i32_1 : i32, i32, i32, i32
  }
  func.func @transform_2(%arg0: i32, %arg1: i32) -> (i32, i32, i32, i32) {
    %c8_i32 = arith.constant 8 : i32
    %0 = arith.muli %arg1, %c8_i32 : i32
    %c8_i32_0 = arith.constant 8 : i32
    %1 = arith.addi %0, %c8_i32_0 : i32
    %c7_i32 = arith.constant 7 : i32
    %2 = arith.minsi %1, %c7_i32 : i32
    %c0_i32 = arith.constant 0 : i32
    %c0_i32_1 = arith.constant 0 : i32
    %c0_i32_2 = arith.constant 0 : i32
    return %arg0, %2, %c0_i32, %c0_i32_1 : i32, i32, i32, i32
  }
  func.func @transform_3(%arg0: i32, %arg1: i32) -> (i32, i32, i32, i32) {
    %c0_i32 = arith.constant 0 : i32
    %c0_i32_0 = arith.constant 0 : i32
    %c0_i32_1 = arith.constant 0 : i32
    return %arg0, %c0_i32, %arg1, %c0_i32_0 : i32, i32, i32, i32
  }
}

</mosaic_0001>

<bundles_post_ra>
// kernel: tpu_custom_call.1
= control target key start
LH: loop header
LB: loop body
LE: loop exit
PB: predicated region body
PF: predicated region fallthrough
CT: control target
= control target key end

     0   :  { %s1855_s0 = inlined_call_operand.hbm [shape: f32[8,8,256], index: 0, kind: input, shape index: {}]   ;;  %s1856_s1 = inlined_call_operand.hbm [shape: f32[8,8,1,256], index: 1, kind: input, shape index: {}]   ;;  %s1857_s2 = inlined_call_operand.hbm [shape: f32[8,8,1,256], index: 2, kind: input, shape index: {}]   ;;  %s1858_s3 = inlined_call_operand.hbm [shape: f32[8,3,8,256], index: 3, kind: output, shape index: {}]  }
   0x1   :  { %1868 = sst [smem:[#allocation16_spill]] %s1856_s1 }
   0x2   :  { %8 = vsyncpa [#allocation3], 0 }
   0x3   :  { %10 = vsyncpa [#allocation3 + $0x1], 0 }
   0x4   :  { %11 = vsyncpa [#allocation6], 0 }
   0x5   :  { %13 = vsyncpa [#allocation6 + $0x1], 0 }
   0x6   :  { %14 = vsyncpa [#allocation4], 0 }
   0x7   :  { %16 = vsyncpa [#allocation4 + $0x1], 0  ;;  %s1245_s12 = smov 0   ;;  %s1247_s13 = smov 0  }
   0x8   :  { %s1249_s14 = smov 0   ;;  %s1251_s15 = smov 0  }
   0x9   :  { %s1253_s16 = smov 0   ;;  %s1255_s17 = smov 0  }
   0xa LB: > { %1869 = sst [smem:[#allocation12_spill]] %s1198_s14  ;;  %s1276_s18 = sadd.s32 4294967295, %s1210_s17   ;;  %s1210_s17 = sphi %s1255_s17, %s22_s17   ;;  %s1206_s16 = sphi %s1253_s16, %s1900_s16   ;;  %s1202_s15 = sphi %s1251_s15, %s1899_s15   ;;  %s1198_s14 = sphi %s1249_s14, %s1898_s14   ;;  %s1194_s13 = sphi %s1247_s13, %s1902_s13   ;;  %s1190_s12 = sphi %s1245_s12, %s1901_s12  }
   0xb   : > { %1870 = sst [smem:[#allocation13_spill]] %s1206_s16  ;;  %s903_s19 = sadd.s32 4294967294, %s1210_s17  }
   0xc   : > { %s34_s20 = sadd.s32 1, %s1206_s16  ;;  %s43_s21 = sadd.s32 1, %s1198_s14 }
   0xd   : > { %p36_p0 = scmp.ge.s32.totalorder %s34_s20, 2  ;;  %p50_p1 = scmp.ne.s32.totalorder %s1198_s14, %s1194_s13 }
   0xe   : > { %p51_p2 = scmp.eq.s32.totalorder %s1210_s17, 0  ;;  %p56_p3 = scmp.ne.s32.totalorder %s1194_s13, %s1190_s12 }
   0xf   : > { %s1904_s20 = smov (%p36_p0, %s34_s20), 0  ;;  %p57_p5 = scmp.eq.s32.totalorder %s1276_s18, 0 }
  0x10   : > { %1871 = sst [smem:[#allocation14_spill]] %s1904_s20  ;;  %p1288_p4 = por %p51_p2, %p50_p1 }
  0x11   : > { %s38_s23 = ssub.s32 %s1206_s16, %s1904_s20  ;;  %p154_p6 = scmp.eq.s32.totalorder %s1276_s18, 1 }
  0x12   : > { %p41_p7 = scmp.eq.s32.totalorder %s38_s23, 0  ;;  %p1296_p8 = por %p57_p5, %p56_p3 }
  0x13   : > { %p1300_p9 = por %p154_p6, %p50_p1  ;;  %p160_p10 = scmp.eq.s32.totalorder %s903_s19, 1 }
  0x14   : > { %s1873_s24 = scalar_select %p1296_p8, 1, 0 }
  0x15   : > { %s1874_s25 = scalar_select %p1300_p9, 1, 0 }
  0x16   : > { %s1305_s26 = scalar_select %p41_p7, %s1198_s14, %s43_s21  }
  0x17   : > { %p1307_p11 = por %p160_p10, %p56_p3  ;;  %p975_p13 = scmp.lt.s32.totalorder %s1210_s17, 2 }
  0x18   : > { %1875 = sst [smem:[#allocation15_spill]] %s1305_s26  ;;  %s1314_s28 = sand.u32 1, %s1198_s14  }
  0x19   : > { %s1876_s27 = scalar_select %p1307_p11, 1, 0 }
  0x1a   : > { %s1317_s29 = sshll.u32 %s1206_s16, 10  ;;  %p1321_p0 = pnand %p975_p13, %p1288_p4 }
  0x1b   : > { %s204_s4 = sand.u32 1, %s1210_s17   ;;  %s910_s5 = sshll.u32 %s1314_s28, 3 }
  0x1c   : > { %s1878_s1 = sld [smem:[#allocation16_spill]]  ;;  %s208_s9 = scalar_lea.vmem [#allocation5], %s910_s5 }
  0x1d   : > { %s222_s10 = sshll.u32 %s208_s9, 4  ;;  %s1337_s11 = scalar_lea.sflag [#allocation6], %s204_s4  ;;  %s1335_s10 = int_to_ptr.vmem [resolvable:$true] %s222_s10 }
  0x1e   : > { %p1343_p2 = pneg %p1321_p0 }
  0x22   : > { %s1331_s8 = scalar_lea.hbm %s1878_s1, %s1317_s29  ;;  %s1039_s6 = scalar_lea.hbm %s1878_s1, 2048 }
  0x23   : > { %s1034_s19 = scalar_lea.hbm %s1331_s8, 128  ;;  %p1040_p5 = scmp.lt.u32.totalorder %s1331_s8, %s1878_s1 }
  0x24   : > { %p1035_p1 = scmp.ne.s32.totalorder %s1331_s8, %s1034_s19  ;;  %p1041_p6 = scmp.lt.u32.totalorder %s1039_s6, %s1034_s19 }
  0x25   : > { %p1043_p10 = scmp.lt.u32.totalorder %s1034_s19, %s1331_s8 }
  0x26   : > { %p1037_p3 = pnand %p1343_p2, %p1035_p1  ;;  %p1042_p7 = por %p1041_p6, %p1040_p5 }
  0x28   : > { %p1038_p4 = pneg %p1037_p3  ;;  %p1044_p13 = por %p1043_p10, %p1042_p7 }
  0x2a   : > { %p1045_p12 = pnand %p1044_p13, %p1038_p4 }
  0x2c   : > { %1048 = shalt.err (!%p1045_p12)
}
  0x2d   : > { %s1049_s4 = scalar_lea.vmem %s1335_s10, 128  ;;  %s1212_s22 = smov [#allocation5]  }
  0x2e   : > { %p1050_p1 = scmp.ne.s32.totalorder %s1335_s10, %s1049_s4  ;;  %s1054_s23 = sshll.u32 %s1212_s22, 4  ;;  %s1055_s23 = int_to_ptr.vmem [resolvable:$false] %s1054_s23 }
  0x2f   : > { %s1056_s7 = scalar_lea.vmem %s1055_s23, 256  ;;  %p1057_p9 = scmp.lt.s32.totalorder %s1335_s10, %s1055_s23 }
  0x30   : > { %p1052_p3 = pnand %p1050_p1, %p1343_p2  ;;  %p1058_p8 = scmp.lt.s32.totalorder %s1056_s7, %s1049_s4 }
  0x32   : > { %p1053_p11 = pneg %p1052_p3  ;;  %p1059_p5 = por %p1058_p8, %p1057_p9 }
  0x34   : > { %p1060_p6 = pnand %p1059_p5, %p1053_p11 }
  0x36   : > { %1063 = shalt.err (!%p1060_p6)
}
  0x37   : > { %s1865_s19 = smov 256   ;;  %s1863_s6 = smov 32  }
  0x38   : > { %s1864_s9 = smov 2   ;;  %s236_s4 = scalar_lea.vmem [#allocation7], %s910_s5 }
  0x39   : > { %967 = dma.hbm_to_vmem [thread:$0]  (!%p1321_p0), %s1331_s8, 128, %s1335_s10, %s1337_s11, %s1865_s19, %s1863_s6, %s1864_s9  }
  0x3a   : > { %s250_s22 = sshll.u32 %s236_s4, 4  ;;  %p918_p8 = scmp.ge.s32.totalorder %s1210_s17, 1  ;;  %s1373_s22 = int_to_ptr.vmem [resolvable:$true] %s250_s22 }
  0x3b   : > { %p258_p9 = scmp.lt.s32.totalorder %s1210_s17, 3  ;;  %s906_s7 = sshll.u32 %s1314_s28, 6 }
  0x3c   : > { %s1385_s16 = scalar_lea.hbm %s1855_s0, %s1317_s29  ;;  %s184_s5 = scalar_lea.vmem [#allocation2], %s906_s7 }
  0x3d   : > { %p1376_p11 = pnand %p918_p8, %p258_p9  ;;  %s194_s8 = sshll.u32 %s184_s5, 4  ;;  %s1388_s8 = int_to_ptr.vmem [resolvable:$true] %s194_s8 }
  0x3e   : > { %s949_s10 = sadd.s32 224, %s1317_s29  ;;  %s181_s19 = scalar_lea.sflag [#allocation3], %s1314_s28 }
  0x3f   : > { %s1880_s23 = scalar_select %p1376_p11, 1, 0 }
  0x40   : > { %s1393_s9 = scalar_lea.hbm %s1857_s2, %s949_s10  ;;  %s1064_s26 = scalar_lea.hbm %s1385_s16, 1024 }
  0x41   : > { %p1065_p12 = scmp.ne.s32.totalorder %s1385_s16, %s1064_s26  ;;  %s1069_s14 = scalar_lea.hbm %s1855_s0, 2048 }
  0x42   : > { %p1070_p10 = scmp.lt.u32.totalorder %s1385_s16, %s1855_s0  ;;  %p1071_p13 = scmp.lt.u32.totalorder %s1069_s14, %s1064_s26 }
  0x43   : > { %p1067_p4 = pnand %p1065_p12, %p1343_p2  ;;  %p1073_p3 = scmp.lt.u32.totalorder %s1064_s26, %s1385_s16 }
  0x44   : > { %p1072_p1 = por %p1071_p13, %p1070_p10 }
  0x45   : > { %p1068_p7 = pneg %p1067_p4 }
  0x46   : > { %p1074_p5 = por %p1073_p3, %p1072_p1 }
  0x48   : > { %p1075_p6 = pnand %p1074_p5, %p1068_p7 }
  0x4a   : > { %1078 = shalt.err (!%p1075_p6)
}
  0x4b   : > { %s1079_s29 = scalar_lea.vmem %s1388_s8, 1024  ;;  %s1216_s6 = smov [#allocation2]  }
  0x4c   : > { %p1080_p8 = scmp.ne.s32.totalorder %s1388_s8, %s1079_s29  ;;  %s1084_s10 = sshll.u32 %s1216_s6, 4  ;;  %s1085_s10 = int_to_ptr.vmem [resolvable:$false] %s1084_s10 }
  0x4d   : > { %s1086_s4 = scalar_lea.vmem %s1085_s10, 2048  ;;  %p1087_p4 = scmp.lt.s32.totalorder %s1388_s8, %s1085_s10 }
  0x4e   : > { %p1082_p9 = pnand %p1080_p8, %p1343_p2  ;;  %p1088_p11 = scmp.lt.s32.totalorder %s1086_s4, %s1079_s29 }
  0x50   : > { %p1083_p12 = pneg %p1082_p9  ;;  %p1089_p10 = por %p1088_p11, %p1087_p4 }
  0x52   : > { %p1090_p13 = pnand %p1089_p10, %p1083_p12 }
  0x54   : > { %1093 = shalt.err (!%p1090_p13)
}
  0x55   : > { %s1217_s14 = smov 16   ;;  %s1881_s26 = smov 256  }
  0x56   : > { %964 = dma.hbm_to_vmem [thread:$0]  (!%p1321_p0), %s1385_s16, 1024, %s1388_s8, %s181_s19, %s1881_s26, %s1881_s26, %s1217_s14  }
  0x57   : > { %s1094_s1 = scalar_lea.hbm %s1393_s9, 128  ;;  %s1099_s5 = scalar_lea.hbm %s1857_s2, 2048 }
  0x58   : > { %p1095_p7 = scmp.ne.s32.totalorder %s1393_s9, %s1094_s1  ;;  %p1100_p3 = scmp.lt.u32.totalorder %s1393_s9, %s1857_s2 }
  0x59   : > { %p1101_p5 = scmp.lt.u32.totalorder %s1099_s5, %s1094_s1  ;;  %p1103_p8 = scmp.lt.u32.totalorder %s1094_s1, %s1393_s9 }
  0x5a   : > { %p1097_p11 = pnand %p1095_p7, %p1343_p2 }
  0x5b   : > { %p1102_p6 = por %p1101_p5, %p1100_p3 }
  0x5c   : > { %p1098_p1 = pneg %p1097_p11 }
  0x5d   : > { %p1104_p9 = por %p1103_p8, %p1102_p6 }
  0x5f   : > { %p1105_p12 = pnand %p1104_p9, %p1098_p1 }
  0x61   : > { %1108 = shalt.err (!%p1105_p12)
}
  0x62   : > { %s1109_s16 = scalar_lea.vmem %s1373_s22, 128  ;;  %s1218_s28 = smov [#allocation7]  }
  0x63   : > { %p1110_p4 = scmp.ne.s32.totalorder %s1373_s22, %s1109_s16  ;;  %s1114_s19 = sshll.u32 %s1218_s28, 4  ;;  %s1115_s19 = int_to_ptr.vmem [resolvable:$false] %s1114_s19 }
  0x64   : > { %s1116_s8 = scalar_lea.vmem %s1115_s19, 256  ;;  %p1117_p7 = scmp.lt.s32.totalorder %s1373_s22, %s1115_s19 }
  0x65   : > { %p1112_p10 = pnand %p1110_p4, %p1343_p2  ;;  %p1118_p11 = scmp.lt.s32.totalorder %s1116_s8, %s1109_s16 }
  0x67   : > { %p1113_p13 = pneg %p1112_p10  ;;  %p1119_p3 = por %p1118_p11, %p1117_p7 }
  0x69   : > { %p1120_p5 = pnand %p1119_p3, %p1113_p13 }
  0x6b   : > { %1123 = shalt.err (!%p1120_p5)
}
  0x6c   : > { %s1882_s10 = smov 2   ;;  %s1883_s4 = smov 32  }
  0x6d   : > { %970 = dma.hbm_to_vmem [thread:$0]  (!%p1321_p0), %s1393_s9, 128, %s1373_s22, %s1337_s11, %s1881_s26, %s1883_s4, %s1882_s10  }
  0x6e   : > { %p1884_p2 = scmp.ne.s32.totalorder %s1880_s23, 0 }
  0x6f   : > { %s1449_s21 = sand.u32 (!%p1884_p2), 1, %s1194_s13   ;;  %p1885_p1 = scmp.ne.s32.totalorder (!%p1884_p2), %s1873_s24, 0 }
  0x70   : > { %262 = sbr.rel (%p1884_p2) target bundleno = 322 (0x142), region = 32  ;;  %s919_s14 = sshll.u32 (!%p1884_p2), %s1449_s21, 6 }
  0x71   : > { %s265_s1 = scalar_lea.sflag (!%p1884_p2), [#allocation3], %s1449_s21  ;;  %s1453_s20 = scalar_lea.vmem (!%p1884_p2), [#allocation2], %s919_s14 }
  0x77   : > { %1177 = dma.done.wait (%p1885_p1), %s265_s1, 1024  }
  0x78   : > { %1179 = vsyncadd (%p1885_p1), %s265_s1, 4294966272  ;;  %s273_s30 = sand.u32 1, %s1276_s18   ;;  %s920_s11 = sshll.u32 %s1449_s21, 3 }
  0x79   : > { %s274_s9 = scalar_lea.sflag [#allocation6], %s273_s30  ;;  %s1463_s22 = scalar_lea.vmem [#allocation5], %s920_s11 }
  0x7a   : > { %1181 = dma.done.wait (%p1885_p1), %s274_s9, 256  }
  0x7b   : > { %1183 = vsyncadd (%p1885_p1), %s274_s9, 4294967040  ;;  %v339_v0 = vlaneseq  ;;  %v1471_v2 = vld [vmem:[%s1453_s20 + $0x20] sm:$0xff]  ;;  %vm646_vm0 = vcmask 1040384   ;;  %vm715_vm1 = vcmask 1046528   ;;  %s1219_s18 = smov 127   ;;  %v1483_v6 = vld [vmem:[%s1453_s20 + $0x30] sm:$0xff] }
  0x7c   : > { %v1474_v3 = vld [vmem:[%s1453_s20] sm:$0xff]  ;;  %372 = vrot.lane.b32.xlu1 %v1471_v2, %s1219_s18  ;;  %v634_v4 = vrot.slane %v1471_v2, 7  ;;  %v659_v5 = vrot.slane %v1471_v2, 1  ;;  %v636_v11 = vrot.slane %v1483_v6, 7  ;;  %v661_v12 = vrot.slane %v1483_v6, 1  ;;  %v1494_v13 = vld [vmem:[%s1453_s20 + $0x10] sm:$0xff] }
  0x7d   : > { %v583_v1 = vshrl.u32 %v339_v0, 7  ;;  %368 = vrot.lane.b32.xlu0 %v1474_v3, %s1219_s18  ;;  %v630_v9 = vrot.slane %v1474_v3, 7  ;;  %v655_v10 = vrot.slane %v1474_v3, 1  ;;  %v1497_v14 = vld [vmem:[%s1453_s20 + $0x18] sm:$0xff]  ;;  %v632_v15 = vrot.slane %v1494_v13, 7  ;;  %v1503_v18 = vld [vmem:[%s1453_s20 + $0x8] sm:$0xff] }
  0x7e   : > { %v657_v16 = vrot.slane %v1494_v13, 1  ;;  %v633_v17 = vrot.slane %v1497_v14, 7  ;;  %v1506_v19 = vld [vmem:[%s1453_s20 + $0x38] sm:$0xff]  ;;  %v1509_v20 = vld [vmem:[%s1453_s20 + $0x28] sm:$0xff]  ;;  %v658_v21 = vrot.slane %v1497_v14, 1  ;;  %v631_v22 = vrot.slane %v1503_v18, 7 }
  0x7f   : > { %v1485_v7 = vsub.s32 0, %v583_v1  ;;  %v1487_v8 = vsub.s32 1, %v583_v1  ;;  %v637_v23 = vrot.slane %v1506_v19, 7  ;;  %v635_v24 = vrot.slane %v1509_v20, 7  ;;  %v570_v25 = vld [vmem:[%s1463_s22] sm:$0x3] }
  0x80   : > { %374 = vrot.lane.b32.xlu1 %v1483_v6, %s1219_s18  ;;  %v662_v26 = vrot.slane %v1506_v19, 1  ;;  %v660_v27 = vrot.slane %v1509_v20, 1  ;;  %v571_v28 = vld [vmem:[%s1463_s22 + $0x2] sm:$0x3]  ;;  %v572_v29 = vld [vmem:[%s1463_s22 + $0x4] sm:$0x3] }
  0x81   : > { %370 = vrot.lane.b32.xlu0 %v1494_v13, %s1219_s18  ;;  %v585_v30 = vrot.slane %v570_v25, %v1485_v7  ;;  %v589_v31 = vrot.slane %v570_v25, %v1487_v8  ;;  %v573_v32 = vld [vmem:[%s1463_s22 + $0x6] sm:$0x3]  ;;  %s286_s24 = scalar_lea.vmem [#allocation7], %s920_s11  ;;  %v593_v35 = vrot.slane %v571_v28, %v1485_v7  ;;  %v597_v36 = vrot.slane %v571_v28, %v1487_v8  ;;  %s951_s23 = smul.u32 192, %s1449_s21 }
  0x82   : > { %v574_v33 = vld [vmem:[%s286_s24] sm:$0x3]  ;;  %v575_v34 = vld [vmem:[%s286_s24 + $0x2] sm:$0x3]  ;;  %v601_v37 = vrot.slane %v572_v29, %v1485_v7  ;;  %v605_v38 = vrot.slane %v572_v29, %v1487_v8  ;;  %v576_v39 = vld [vmem:[%s286_s24 + $0x4] sm:$0x3]  ;;  %v609_v41 = vrot.slane %v573_v32, %v1485_v7  ;;  %v613_v42 = vrot.slane %v573_v32, %v1487_v8 }
  0x83   : > { %v577_v40 = vld [vmem:[%s286_s24 + $0x6] sm:$0x3]  ;;  %v678_v43 = vrot.slane %v574_v33, %v1485_v7  ;;  %v682_v44 = vrot.slane %v574_v33, %v1487_v8  ;;  %v686_v47 = vrot.slane %v575_v34, %v1485_v7  ;;  %v690_v48 = vrot.slane %v575_v34, %v1487_v8  ;;  %s1575_s26 = scalar_lea.vmem [#allocation8], %s951_s23  ;;  %s1220_s7 = smov 1  }
  0x84   : > { %v651_v45 = vsel %vm646_vm0, %v601_v37, %v634_v4  ;;  %v652_v46 = vsel %vm646_vm0, %v605_v38, %v635_v24  ;;  %378 = vrot.lane.b32.xlu1 %v1497_v14, %s1219_s18  ;;  %v656_v49 = vrot.slane %v1503_v18, 1  ;;  %v653_v50 = vsel %vm646_vm0, %v609_v41, %v636_v11  ;;  %s1221_s5 = smov 112   ;;  %s1222_s29 = smov 16  }
  0x85   : > { %376 = vrot.lane.b32.xlu0 %v1503_v18, %s1219_s18  ;;  %v654_v51 = vsel %vm646_vm0, %v613_v42, %v637_v23  ;;  %v694_v52 = vrot.slane %v576_v39, %v1485_v7  ;;  %v698_v53 = vrot.slane %v576_v39, %v1487_v8  ;;  %v702_v54 = vrot.slane %v577_v40, %v1485_v7  ;;  %s952_s6 = smul.u32 3072, %s1202_s15  ;;  %s766_s15 = sshll.u32 %s1575_s26, 4  ;;  %s1802_s15 = int_to_ptr.vmem [resolvable:$true] %s766_s15 }
  0x86   : > { %v706_v55 = vrot.slane %v577_v40, %v1487_v8  ;;  %v647_v56 = vsel %vm646_vm0, %v585_v30, %v630_v9  ;;  %v648_v58 = vsel %vm646_vm0, %v589_v31, %v631_v22  ;;  %v649_v59 = vsel %vm646_vm0, %v593_v35, %v632_v15  ;;  %s750_s8 = scalar_lea.sflag [#allocation4], %s1449_s21  ;;  %s1124_s10 = scalar_lea.vmem %s1802_s15, 3072 }
  0x87   : > { %v720_v57 = vsel %vm715_vm1, %v659_v5, %v694_v52  ;;  %v650_v60 = vsel %vm646_vm0, %v597_v36, %v633_v17  ;;  %v721_v61 = vsel %vm715_vm1, %v660_v27, %v698_v53  ;;  %v722_v62 = vsel %vm715_vm1, %v661_v12, %v702_v54  ;;  %s1799_s19 = scalar_lea.hbm %s1858_s3, %s952_s6  ;;  %p1125_p0 = scmp.ne.s32.totalorder %s1802_s15, %s1124_s10 }
  0x88   : > { %v723_v63 = vsel %vm715_vm1, %v662_v26, %v706_v55  ;;  %v728_v1 = vsub.f32 %v651_v45, %v720_v57  ;;  %382 = vrot.lane.b32.xlu1 %v1506_v19, %s1219_s18  ;;  %v729_v4 = vsub.f32 %v652_v46, %v721_v61  ;;  %v730_v5 = vsub.f32 %v653_v50, %v722_v62  ;;  %p1894_p6 = scmp.ne.s32.totalorder %s1874_s25, 0  ;;  %s1223_s4 = smov [#allocation8]  }
  0x89   : > { %380 = vrot.lane.b32.xlu0 %v1509_v20, %s1219_s18  ;;  %v731_v7 = vsub.f32 %v654_v51, %v723_v63  ;;  %v716_v9 = vsel %vm715_vm1, %v655_v10, %v678_v43  ;;  %v717_v11 = vsel %vm715_vm1, %v656_v49, %v682_v44  ;;  %v718_v12 = vsel %vm715_vm1, %v657_v16, %v686_v47  ;;  %s1128_s14 = sshll.u32 %s1223_s4, 4  ;;  %s1129_s14 = int_to_ptr.vmem [resolvable:$false] %s1128_s14 }
  0x8a   : > { %v736_v8 = vmul.f32 0.5, %v728_v1  ;;  %v737_v15 = vmul.f32 0.5, %v729_v4  ;;  %v738_v17 = vmul.f32 0.5, %v730_v5  ;;  %v719_v23 = vsel %vm715_vm1, %v658_v21, %v690_v48  ;;  %p1126_p8 = pnand %p1125_p0, %p1894_p6  ;;  %s1130_s1 = scalar_lea.vmem %s1129_s14, 6144 }
  0x8b   : > { %v739_v22 = vmul.f32 0.5, %v731_v7  ;;  %v724_v10 = vsub.f32 %v647_v56, %v716_v9  ;;  %v725_v24 = vsub.f32 %v648_v58, %v717_v11  ;;  %v726_v16 = vsub.f32 %v649_v59, %v718_v12  ;;  %p1131_p12 = scmp.lt.s32.totalorder %s1802_s15, %s1129_s14  ;;  %p1132_p4 = scmp.lt.s32.totalorder %s1130_s1, %s1124_s10 }
  0x8c   : > { %934 = vst [vmem:[%s1575_s26 + $0x80] sm:$0xff] %v736_v8  ;;  %v727_v25 = vsub.f32 %v650_v60, %v719_v23  ;;  %409 = vrot.lane.b32.xlu1 %v1494_v13, %s1220_s7  ;;  %935 = vst [vmem:[%s1575_s26 + $0x88] sm:$0xff] %v737_v15  ;;  %v1618_v33 = vand.u32 127, %v339_v0  ;;  %p1127_p9 = pneg %p1126_p8 }
  0x8d   : > { %407 = vrot.lane.b32.xlu0 %v1474_v3, %s1220_s7  ;;  %936 = vst [vmem:[%s1575_s26 + $0xb0] sm:$0xff] %v738_v17  ;;  %937 = vst [vmem:[%s1575_s26 + $0xb8] sm:$0xff] %v739_v22  ;;  %v732_v21 = vmul.f32 0.5, %v724_v10  ;;  %v733_v26 = vmul.f32 0.5, %v725_v24  ;;  %v734_v27 = vmul.f32 0.5, %v726_v16  ;;  %p1133_p10 = por %p1132_p4, %p1131_p12 }
  0x8e   : > { %v735_v28 = vmul.f32 0.5, %v727_v25  ;;  %v1621_v36 = vadd.s32 128, %v1618_v33  ;;  %v346_v39 = vand.u32 15, %v1618_v33  ;;  %vm384_vm2 = vcmp.lt.s32.totalorder %v1618_v33, 127 }
  0x8f   : > { %930 = vst [vmem:[%s1575_s26 + $0x20] sm:$0xff] %v732_v21  ;;  %931 = vst [vmem:[%s1575_s26 + $0x28] sm:$0xff] %v733_v26  ;;  %vm423_vm7 = vcmp.lt.s32.totalorder %v1618_v33, 1  ;;  %vm486_vm8 = vcmp.lt.s32.totalorder %v1618_v33, 112  ;;  %vm507_vm10 = vcmp.lt.s32.totalorder %v1618_v33, 16  ;;  %p1134_p13 = pnand %p1133_p10, %p1127_p9 }
  0x90   : > { %932 = vst [vmem:[%s1575_s26 + $0x50] sm:$0xff] %v734_v27  ;;  %933 = vst [vmem:[%s1575_s26 + $0x58] sm:$0xff] %v735_v28  ;;  %413 = vrot.lane.b32.xlu1 %v1483_v6, %s1220_s7  ;;  %v353_v40 = vand.u32 15, %v1621_v36  ;;  %vm1626_vm3 = vcmp.eq.s32.totalorder %v346_v39, 15  ;;  %vm1642_vm5 = vcmp.eq.s32.totalorder %v346_v39, 0  ;;  %vm469_vm9 = vcmp.ge.s32.totalorder %v1621_v36, 240 }
  0x91   : > { %411 = vrot.lane.b32.xlu0 %v1471_v2, %s1220_s7 }
  0x92   : > { %vm1630_vm4 = vcmp.eq.s32.totalorder %v353_v40, 15  ;;  %vm1646_vm6 = vcmp.eq.s32.totalorder %v353_v40, 0 }
  0x94   : > { %417 = vrot.lane.b32.xlu1 %v1497_v14, %s1220_s7 }
  0x95   : > { %415 = vrot.lane.b32.xlu0 %v1503_v18, %s1220_s7 }
  0x98   : > { %421 = vrot.lane.b32.xlu1 %v1506_v19, %s1220_s7 }
  0x99   : > { %419 = vrot.lane.b32.xlu0 %v1509_v20, %s1220_s7 }
  0x9c   : > { %472 = vrot.lane.b32.xlu1 %v1494_v13, %s1221_s5 }
  0x9d   : > { %470 = vrot.lane.b32.xlu0 %v1474_v3, %s1221_s5 }
  0xa0   : > { %476 = vrot.lane.b32.xlu1 %v1483_v6, %s1221_s5 }
  0xa1   : > { %474 = vrot.lane.b32.xlu0 %v1471_v2, %s1221_s5 }
  0xa4   : > { %480 = vrot.lane.b32.xlu1 %v1497_v14, %s1221_s5 }
  0xa5   : > { %478 = vrot.lane.b32.xlu0 %v1503_v18, %s1221_s5 }
  0xa8   : > { %484 = vrot.lane.b32.xlu1 %v1506_v19, %s1221_s5 }
  0xa9   : > { %482 = vrot.lane.b32.xlu0 %v1509_v20, %s1221_s5 }
  0xac   : > { %511 = vrot.lane.b32.xlu1 %v1494_v13, %s1222_s29 }
  0xad   : > { %509 = vrot.lane.b32.xlu0 %v1474_v3, %s1222_s29 }
  0xb0   : > { %515 = vrot.lane.b32.xlu1 %v1483_v6, %s1222_s29 }
  0xb1   : > { %513 = vrot.lane.b32.xlu0 %v1471_v2, %s1222_s29 }
  0xb4   : > { %519 = vrot.lane.b32.xlu1 %v1497_v14, %s1222_s29 }
  0xb5   : > { %517 = vrot.lane.b32.xlu0 %v1503_v18, %s1222_s29 }
  0xb8   : > { %523 = vrot.lane.b32.xlu1 %v1506_v19, %s1222_s29 }
  0xb9   : > { %521 = vrot.lane.b32.xlu0 %v1509_v20, %s1222_s29 }
  0xee   : > { %v373_v29 = vpop.permute.xlu1 %372 }
  0xef   : > { %v369_v30 = vpop.permute.xlu0 %368 }
  0xf2   : > { %v375_v31 = vpop.permute.xlu1 %374 }
  0xf3   : > { %v371_v32 = vpop.permute.xlu0 %370 }
  0xf6   : > { %v379_v34 = vpop.permute.xlu1 %378 }
  0xf7   : > { %v377_v35 = vpop.permute.xlu0 %376  ;;  %v386_v44 = vsel %vm384_vm2, %v371_v32, %v379_v34  ;;  %v390_v45 = vsel %vm384_vm2, %v379_v34, %v371_v32 }
  0xf8   : > { %v385_v46 = vsel %vm384_vm2, %v369_v30, %v377_v35  ;;  %v389_v47 = vsel %vm384_vm2, %v377_v35, %v369_v30  ;;  %v399_v52 = vsel %vm1626_vm3, %v1494_v13, %v386_v44  ;;  %v400_v53 = vsel %vm1630_vm4, %v1497_v14, %v390_v45 }
  0xf9   : > { %v397_v54 = vsel %vm1626_vm3, %v1474_v3, %v385_v46  ;;  %v398_v55 = vsel %vm1630_vm4, %v1503_v18, %v389_v47 }
  0xfa   : > { %v383_v37 = vpop.permute.xlu1 %382 }
  0xfb   : > { %v381_v38 = vpop.permute.xlu0 %380  ;;  %v388_v56 = vsel %vm384_vm2, %v375_v31, %v383_v37  ;;  %v392_v57 = vsel %vm384_vm2, %v383_v37, %v375_v31 }
  0xfc   : > { %v387_v58 = vsel %vm384_vm2, %v373_v29, %v381_v38  ;;  %v391_v59 = vsel %vm384_vm2, %v381_v38, %v373_v29  ;;  %v403_v22 = vsel %vm1626_vm3, %v1483_v6, %v388_v56  ;;  %v404_v23 = vsel %vm1630_vm4, %v1506_v19, %v392_v57 }
  0xfd   : > { %v401_v10 = vsel %vm1626_vm3, %v1471_v2, %v387_v58  ;;  %v402_v24 = vsel %vm1630_vm4, %v1509_v20, %v391_v59 }
  0xfe   : > { %v410_v41 = vpop.permute.xlu1 %409 }
  0xff   : > { %v408_v42 = vpop.permute.xlu0 %407 }
 0x102   : > { %v414_v48 = vpop.permute.xlu1 %413 }
 0x103   : > { %v412_v49 = vpop.permute.xlu0 %411 }
 0x106   : > { %v418_v60 = vpop.permute.xlu1 %417 }
 0x107   : > { %v416_v61 = vpop.permute.xlu0 %415  ;;  %v425_v62 = vsel %vm423_vm7, %v410_v41, %v418_v60  ;;  %v429_v63 = vsel %vm423_vm7, %v418_v60, %v410_v41 }
 0x108   : > { %v424_v1 = vsel %vm423_vm7, %v408_v42, %v416_v61  ;;  %v428_v4 = vsel %vm423_vm7, %v416_v61, %v408_v42  ;;  %v438_v5 = vsel %vm1642_vm5, %v1494_v13, %v429_v63  ;;  %v439_v7 = vsel %vm1646_vm6, %v1497_v14, %v425_v62 }
 0x109   : > { %v436_v8 = vsel %vm1642_vm5, %v1474_v3, %v428_v4  ;;  %v437_v9 = vsel %vm1646_vm6, %v1503_v18, %v424_v1  ;;  %v446_v11 = vsub.f32 %v399_v52, %v438_v5  ;;  %v447_v12 = vsub.f32 %v400_v53, %v439_v7 }
 0x10a   : > { %v444_v15 = vsub.f32 %v397_v54, %v436_v8  ;;  %v445_v17 = vsub.f32 %v398_v55, %v437_v9  ;;  %v422_v16 = vpop.permute.xlu1 %421 }
 0x10b   : > { %v420_v25 = vpop.permute.xlu0 %419  ;;  %v454_v21 = vmul.f32 0.5, %v446_v11  ;;  %v455_v26 = vmul.f32 0.5, %v447_v12  ;;  %v427_v29 = vsel %vm423_vm7, %v414_v48, %v422_v16  ;;  %v431_v30 = vsel %vm423_vm7, %v422_v16, %v414_v48 }
 0x10c   : > { %v452_v27 = vmul.f32 0.5, %v444_v15  ;;  %v453_v28 = vmul.f32 0.5, %v445_v17  ;;  %v426_v31 = vsel %vm423_vm7, %v412_v49, %v420_v25  ;;  %v430_v32 = vsel %vm423_vm7, %v420_v25, %v412_v49 }
 0x10d   : > { %462 = vst [vmem:[%s1575_s26 + $0x30] sm:$0xff] %v454_v21  ;;  %463 = vst [vmem:[%s1575_s26 + $0x38] sm:$0xff] %v455_v26  ;;  %v442_v34 = vsel %vm1642_vm5, %v1483_v6, %v431_v30  ;;  %v443_v35 = vsel %vm1646_vm6, %v1506_v19, %v427_v29  ;;  %v440_v37 = vsel %vm1642_vm5, %v1471_v2, %v430_v32 }
 0x10e   : > { %460 = vst [vmem:[%s1575_s26] sm:$0xff] %v452_v27  ;;  %461 = vst [vmem:[%s1575_s26 + $0x8] sm:$0xff] %v453_v28  ;;  %v441_v38 = vsel %vm1646_vm6, %v1509_v20, %v426_v31  ;;  %v450_v39 = vsub.f32 %v403_v22, %v442_v34  ;;  %v451_v40 = vsub.f32 %v404_v23, %v443_v35  ;;  %v473_v43 = vpop.permute.xlu1 %472 }
 0x10f   : > { %v448_v41 = vsub.f32 %v401_v10, %v440_v37  ;;  %v449_v42 = vsub.f32 %v402_v24, %v441_v38  ;;  %v471_v0 = vpop.permute.xlu0 %470 }
 0x110   : > { %v458_v44 = vmul.f32 0.5, %v450_v39  ;;  %v459_v45 = vmul.f32 0.5, %v451_v40 }
 0x111   : > { %v456_v46 = vmul.f32 0.5, %v448_v41  ;;  %v457_v47 = vmul.f32 0.5, %v449_v42 }
 0x112   : > { %466 = vst [vmem:[%s1575_s26 + $0x90] sm:$0xff] %v458_v44  ;;  %467 = vst [vmem:[%s1575_s26 + $0x98] sm:$0xff] %v459_v45  ;;  %v477_v48 = vpop.permute.xlu1 %476 }
 0x113   : > { %464 = vst [vmem:[%s1575_s26 + $0x60] sm:$0xff] %v456_v46  ;;  %465 = vst [vmem:[%s1575_s26 + $0x68] sm:$0xff] %v457_v47  ;;  %v475_v49 = vpop.permute.xlu0 %474 }
 0x116   : > { %v481_v50 = vpop.permute.xlu1 %480 }
 0x117   : > { %v479_v52 = vpop.permute.xlu0 %478  ;;  %v492_v58 = vsel %vm486_vm8, %v481_v50, %v473_v43  ;;  %v488_v60 = vsel %vm486_vm8, %v473_v43, %v481_v50 }
 0x118   : > { %v491_v59 = vsel %vm486_vm8, %v479_v52, %v471_v0  ;;  %v487_v61 = vsel %vm486_vm8, %v471_v0, %v479_v52  ;;  %v502_v1 = vsel %vm469_vm9, %v1497_v14, %v492_v58 }
 0x119   : > { %v500_v5 = vsel %vm469_vm9, %v1503_v18, %v491_v59 }
 0x11a   : > { %v485_v51 = vpop.permute.xlu1 %484 }
 0x11b   : > { %v483_v53 = vpop.permute.xlu0 %482  ;;  %v494_v62 = vsel %vm486_vm8, %v485_v51, %v477_v48  ;;  %v490_v22 = vsel %vm486_vm8, %v477_v48, %v485_v51 }
 0x11c   : > { %v493_v63 = vsel %vm486_vm8, %v483_v53, %v475_v49  ;;  %v489_v31 = vsel %vm486_vm8, %v475_v49, %v483_v53 }
 0x11e   : > { %v512_v54 = vpop.permute.xlu1 %511 }
 0x11f   : > { %v510_v55 = vpop.permute.xlu0 %509 }
 0x122   : > { %v516_v56 = vpop.permute.xlu1 %515 }
 0x123   : > { %v514_v57 = vpop.permute.xlu0 %513 }
 0x126   : > { %v520_v4 = vpop.permute.xlu1 %519 }
 0x127   : > { %v518_v7 = vpop.permute.xlu0 %517  ;;  %v526_v8 = vsel %vm507_vm10, %v512_v54, %v520_v4  ;;  %v530_v9 = vsel %vm507_vm10, %v520_v4, %v512_v54 }
 0x128   : > { %v525_v11 = vsel %vm507_vm10, %v510_v55, %v518_v7  ;;  %v529_v12 = vsel %vm507_vm10, %v518_v7, %v510_v55  ;;  %v539_v14 = vsel %vm507_vm10, %v1494_v13, %v530_v9  ;;  %v548_v15 = vsub.f32 %v502_v1, %v526_v8 }
 0x129   : > { %v537_v18 = vsel %vm507_vm10, %v1474_v3, %v529_v12  ;;  %v546_v17 = vsub.f32 %v500_v5, %v525_v11  ;;  %v547_v23 = vsub.f32 %v488_v60, %v539_v14  ;;  %v506_v13 = vsel %vm469_vm9, %v1506_v19, %v494_v62 }
 0x12a   : > { %v545_v10 = vsub.f32 %v487_v61, %v537_v18  ;;  %v556_v24 = vmul.f32 0.5, %v548_v15  ;;  %v524_v25 = vpop.permute.xlu1 %523  ;;  %v504_v3 = vsel %vm469_vm9, %v1509_v20, %v493_v63 }
 0x12b   : > { %v554_v16 = vmul.f32 0.5, %v546_v17  ;;  %v522_v21 = vpop.permute.xlu0 %521  ;;  %v555_v26 = vmul.f32 0.5, %v547_v23  ;;  %v528_v28 = vsel %vm507_vm10, %v516_v56, %v524_v25  ;;  %v532_v29 = vsel %vm507_vm10, %v524_v25, %v516_v56 }
 0x12c   : > { %v553_v27 = vmul.f32 0.5, %v545_v10  ;;  %925 = vst [vmem:[%s1575_s26 + $0x48] sm:$0xff] %v556_v24  ;;  %v543_v19 = vsel %vm507_vm10, %v1483_v6, %v532_v29  ;;  %v552_v36 = vsub.f32 %v506_v13, %v528_v28  ;;  %v527_v20 = vsel %vm507_vm10, %v514_v57, %v522_v21 }
 0x12d   : > { %923 = vst [vmem:[%s1575_s26 + $0x18] sm:$0xff] %v554_v16  ;;  %v531_v30 = vsel %vm507_vm10, %v522_v21, %v514_v57  ;;  %924 = vst [vmem:[%s1575_s26 + $0x40] sm:$0xff] %v555_v26  ;;  %v551_v32 = vsub.f32 %v490_v22, %v543_v19  ;;  %v550_v34 = vsub.f32 %v504_v3, %v527_v20 }
 0x12e   : > { %922 = vst [vmem:[%s1575_s26 + $0x10] sm:$0xff] %v553_v27  ;;  %v541_v6 = vsel %vm507_vm10, %v1471_v2, %v531_v30  ;;  %v560_v35 = vmul.f32 0.5, %v552_v36 }
 0x12f   : > { %v549_v37 = vsub.f32 %v489_v31, %v541_v6  ;;  %v559_v38 = vmul.f32 0.5, %v551_v32  ;;  %v558_v39 = vmul.f32 0.5, %v550_v34 }
 0x130   : > { %929 = vst [vmem:[%s1575_s26 + $0xa8] sm:$0xff] %v560_v35 }
 0x131   : > { %v557_v40 = vmul.f32 0.5, %v549_v37  ;;  %928 = vst [vmem:[%s1575_s26 + $0xa0] sm:$0xff] %v559_v38  ;;  %927 = vst [vmem:[%s1575_s26 + $0x78] sm:$0xff] %v558_v39 }
 0x133   : > { %926 = vst [vmem:[%s1575_s26 + $0x70] sm:$0xff] %v557_v40 }
 0x134   : > { %1137 = shalt.err (!%p1134_p13)
}
 0x135   : > { %s1138_s20 = scalar_lea.hbm %s1799_s19, 3072  ;;  %s1142_s9 = scalar_lea.hbm %s1858_s3, 6144 }
 0x136   : > { %p1139_p7 = scmp.ne.s32.totalorder %s1799_s19, %s1138_s20  ;;  %p1143_p5 = scmp.lt.u32.totalorder %s1799_s19, %s1858_s3 }
 0x137   : > { %p1144_p2 = scmp.lt.u32.totalorder %s1142_s9, %s1138_s20  ;;  %p1146_p0 = scmp.lt.u32.totalorder %s1138_s20, %s1799_s19 }
 0x138   : > { %p1140_p11 = pnand %p1139_p7, %p1894_p6 }
 0x139   : > { %p1145_p1 = por %p1144_p2, %p1143_p5 }
 0x13a   : > { %p1141_p3 = pneg %p1140_p11 }
 0x13b   : > { %p1147_p8 = por %p1146_p0, %p1145_p1 }
 0x13d   : > { %p1148_p9 = pnand %p1147_p8, %p1141_p3 }
 0x13f   : > { %1151 = shalt.err (!%p1148_p9)
}
 0x140   : > { %s1224_s24 = smov 256  }
 0x141   : > { %959 = dma.vmem_to_hbm [thread:$0]  (%p1894_p6), %s1802_s15, 3072, %s1799_s19, %s750_s8, %s1224_s24, %s1224_s24, %s1222_s29  }
 0x142 PF: > { %s781_s23 = sand.u32 1, %s1190_s12   ;;  %p1895_p12 = scmp.ne.s32.totalorder %s1876_s27, 0 }
 0x143   : > { %p1896_p4 = scmp.ge.s32.totalorder %s1210_s17, 2  ;;  %s782_s26 = scalar_lea.sflag [#allocation4], %s781_s23 }
 0x145   : > { %p972_p10 = pnand %p1896_p4, %p1895_p12 }
 0x147   : > { %1185 = dma.done.wait (!%p972_p10), %s782_s26, 3072  }
 0x148   : > { %1187 = vsyncadd (!%p972_p10), %s782_s26, 4294964224  ;;  %s22_s17 = sadd.s32 1, %s1210_s17   ;;  %s1897_s25 = sld [smem:[#allocation12_spill]] }
 0x149   : > { %p19_p13 = scmp.ge.s32.totalorder %s22_s17, 4   ;;  %s1898_s14 = sld [smem:[#allocation15_spill]] }
 0x14a   : > { %s1899_s15 = sld [smem:[#allocation13_spill]]  ;;  %s1900_s16 = sld [smem:[#allocation14_spill]] }
 0x14b   : > { %s1901_s12 = smov %s1194_s13  ;;  %21 = sbr.rel (!%p19_p13) target bundleno = 10 (0xa), region = 103 }
 0x14e   : > { %s1902_s13 = smov %s1897_s25 }
 0x152   :  { %787 = vsyncpa [#allocation3], 1 }
 0x153   :  { %789 = vsyncpa [#allocation3 + $0x1], 1 }
 0x154   :  { %790 = vsyncpa [#allocation6], 1 }
 0x155   :  { %792 = vsyncpa [#allocation6 + $0x1], 1 }
 0x156   :  { %793 = vsyncpa [#allocation4], 1 }
 0x157   :  { %795 = vsyncpa [#allocation4 + $0x1], 1 }

</bundles_post_ra>
